<compile_context>
chip_gen: v6e
topology: v6e:2x2x1
jax: 0.10.0
libtpu: 0.0.40
codegen_flags: <defaults>
</compile_context>

<pallas_src>
import jax
import jax.numpy as jnp
from jax.experimental import pallas as pl
from jax.experimental.pallas import tpu as pltpu

EMB_DIM = 128
H1 = 128
H2 = 64
OUT_DIM = 64
BN_EPS = 1e-5      # nn.BatchNorm1d default
NORM_EPS = 1e-12   # F.normalize default


def _decoder_kernel(x_ref, w1_ref, b1_ref, w2_ref, b2_ref, w3_ref, b3_ref, o_ref):
    # x_ref : (tm, EMB_DIM) tile of points; weights are full (in, out) bf16
    # slabs with eval-mode BatchNorm already folded in.  Matmul operands are
    # bf16 (native MXU rate), accumulation and all elementwise math stay f32.
    x = x_ref[...].astype(jnp.bfloat16)
    h = jnp.dot(x, w1_ref[...], preferred_element_type=jnp.float32) + b1_ref[...]
    h = jnp.maximum(h, 0.0)                                   # ReLU (BN1 folded)
    h = jnp.dot(h.astype(jnp.bfloat16), w2_ref[...],
                preferred_element_type=jnp.float32) + b2_ref[...]
    h = jnp.maximum(h, 0.0)                                   # ReLU (BN2 folded)
    h = jnp.dot(h.astype(jnp.bfloat16), w3_ref[...],
                preferred_element_type=jnp.float32) + b3_ref[...]
    # F.normalize(p=2, dim=channel): per-point L2 norm over channels.
    # max(sqrt(ss), eps) == sqrt(max(ss, eps^2)); rsqrt + multiply keeps the
    # heavy work off the VPU divide path (and the clamp keeps masked ragged
    # rows from producing NaN before their writes are dropped).
    ss = jnp.sum(h * h, axis=-1, keepdims=True)
    inv = jax.lax.rsqrt(jnp.maximum(ss, NORM_EPS * NORM_EPS))
    o_ref[...] = (h * inv).astype(o_ref.dtype)


def _fold_bn(w, b, gamma, beta, mean, var, eps=BN_EPS):
    # eval-mode BN folded into the preceding 1x1 conv:
    #   bn(x@W + b) = x @ (W*s) + ((b - mean)*s + beta),  s = gamma/sqrt(var+eps)
    scale = gamma / jnp.sqrt(var + eps)
    return w * scale[None, :], (b - mean) * scale + beta


def _round_up(x, m):
    return ((x + m - 1) // m) * m


def unet_decoder(x, params, *, tm=4096):
    """x: (B, N, emb_dim) -> (B, N, output_dim). params: conv/bn tensors (eval)."""
    B, N, C = x.shape
    assert C == EMB_DIM
    M = B * N

    # Fold eval-mode BatchNorm into the conv weights/biases (f32), then cast
    # the weights to bf16 for the MXU; biases stay f32 (added to f32 acc).
    w1, b1 = _fold_bn(params["w1"], params["b1"], params["g1"], params["be1"],
                      params["m1"], params["v1"])
    w2, b2 = _fold_bn(params["w2"], params["b2"], params["g2"], params["be2"],
                      params["m2"], params["v2"])
    w3, b3 = _fold_bn(params["w3"], params["b3"], params["g3"], params["be3"],
                      params["m3"], params["v3"])
    w1 = w1.astype(jnp.bfloat16)
    w2 = w2.astype(jnp.bfloat16)
    w3 = w3.astype(jnp.bfloat16)

    # Large row tiles amortize the ~0.35us per-grid-step pipeline overhead.
    # Cap the tile at ~ceil(M/2) rows (8-aligned) so the grid always has at
    # least two steps -> both v7x TensorCores get work.  The ragged final
    # block (M not a multiple of tm_eff) is handled by Pallas masking: no
    # wrapper-side padding or output slicing.
    tm_eff = min(tm, _round_up(pl.cdiv(max(M, 2), 2), 8))
    grid = (pl.cdiv(M, tm_eff),)

    x2d = x.reshape(M, C)

    out2d = pl.pallas_call(
        _decoder_kernel,
        out_shape=jax.ShapeDtypeStruct((M, OUT_DIM), x.dtype),
        grid_spec=pltpu.PrefetchScalarGridSpec(
            num_scalar_prefetch=0,
            grid=grid,
            in_specs=[
                pl.BlockSpec((tm_eff, C), lambda i: (i, 0)),        # x tile
                pl.BlockSpec((C, H1), lambda i: (0, 0)),            # W1 (BN-folded, bf16)
                pl.BlockSpec((1, H1), lambda i: (0, 0)),            # b1 (f32)
                pl.BlockSpec((H1, H2), lambda i: (0, 0)),           # W2 (BN-folded, bf16)
                pl.BlockSpec((1, H2), lambda i: (0, 0)),            # b2 (f32)
                pl.BlockSpec((H2, OUT_DIM), lambda i: (0, 0)),      # W3 (BN-folded, bf16)
                pl.BlockSpec((1, OUT_DIM), lambda i: (0, 0)),       # b3 (f32)
            ],
            out_specs=pl.BlockSpec((tm_eff, OUT_DIM), lambda i: (i, 0)),
        ),
        compiler_params=pltpu.CompilerParams(
            dimension_semantics=("parallel",),   # shards rows across v7x's 2 TCs
        ),
    )(x2d, w1, b1.reshape(1, H1), w2, b2.reshape(1, H2), w3, b3.reshape(1, OUT_DIM))

    return out2d.reshape(B, N, OUT_DIM)


def _reference(x, params):
    # Pure-JAX eval-mode reference of the PyTorch forward (un-folded BN, f32).
    def bn(h, g, be, m, v):
        return (h - m) / jnp.sqrt(v + BN_EPS) * g + be

    h = jnp.einsum("bnc,ch->bnh", x, params["w1"]) + params["b1"]
    h = jnp.maximum(bn(h, params["g1"], params["be1"], params["m1"], params["v1"]), 0.0)
    # dropout1: identity at inference
    h = jnp.einsum("bnh,hk->bnk", h, params["w2"]) + params["b2"]
    h = jnp.maximum(bn(h, params["g2"], params["be2"], params["m2"], params["v2"]), 0.0)
    # dropout2: identity at inference
    h = jnp.einsum("bnk,ko->bno", h, params["w3"]) + params["b3"]
    h = bn(h, params["g3"], params["be3"], params["m3"], params["v3"])
    denom = jnp.maximum(jnp.sqrt(jnp.sum(h * h, axis=-1, keepdims=True)), NORM_EPS)
    return h / denom


# TODO(synk): training-mode Dropout (stateful PRNG masks) and batch-statistic
# BatchNorm are not implemented; this kernel covers the eval-mode forward pass.

if __name__ == "__main__":
    key = jax.random.PRNGKey(0)
    keys = jax.random.split(key, 16)

    B, N = 2, 16  # small shapes consistent with a (B, n_points, emb_dim) input
    x = jax.random.normal(keys[0], (B, N, EMB_DIM), dtype=jnp.float32)

    def mk_layer(kw, kb, kg, kbe, km, kv, fin, fout):
        # Conv1d(fin, fout, 1).weight has shape (fout, fin, 1); stored here
        # pre-transposed as (fin, fout).  BN params/running stats per channel.
        return dict(
            w=jax.random.normal(kw, (fin, fout), jnp.float32) * 0.1,
            b=jax.random.normal(kb, (fout,), jnp.float32) * 0.1,
            g=1.0 + 0.1 * jax.random.normal(kg, (fout,), jnp.float32),
            be=0.1 * jax.random.normal(kbe, (fout,), jnp.float32),
            m=0.1 * jax.random.normal(km, (fout,), jnp.float32),
            v=jax.random.uniform(kv, (fout,), jnp.float32, minval=0.5, maxval=1.5),
        )

    l1 = mk_layer(*keys[1:7], EMB_DIM, H1)
    l2 = mk_layer(*keys[7:13], H1, H2)
    l3 = mk_layer(*jax.random.split(keys[13], 6), H2, OUT_DIM)

    params = {}
    for idx, layer in enumerate((l1, l2, l3), start=1):
        params[f"w{idx}"] = layer["w"]
        params[f"b{idx}"] = layer["b"]
        params[f"g{idx}"] = layer["g"]
        params[f"be{idx}"] = layer["be"]
        params[f"m{idx}"] = layer["m"]
        params[f"v{idx}"] = layer["v"]

    out = unet_decoder(x, params)
    out = jax.block_until_ready(out)

    ref = _reference(x, params)
    assert out.shape == (B, N, OUT_DIM)
    err = float(jnp.max(jnp.abs(out - ref)))
    # bf16 matmul operands (f32 accumulation) -> loosened tolerance vs the
    # all-f32 reference; outputs are L2-normalized so |values| <= 1.
    assert jnp.allclose(out, ref, atol=3e-2, rtol=3e-2), err

    print("KERNEL_OK")
</pallas_src>

<mosaic_0001>
module attributes {stable_mosaic.version = 11 : i64} {
  func.func @_decoder_kernel(%arg0: i32, %arg1: memref<16x128xf32, #tpu.memory_space<vmem>>, %arg2: memref<128x128xbf16, #tpu.memory_space<vmem>>, %arg3: memref<1x128xf32, #tpu.memory_space<vmem>>, %arg4: memref<128x64xbf16, #tpu.memory_space<vmem>>, %arg5: memref<1x64xf32, #tpu.memory_space<vmem>>, %arg6: memref<64x64xbf16, #tpu.memory_space<vmem>>, %arg7: memref<1x64xf32, #tpu.memory_space<vmem>>, %arg8: memref<16x64xf32, #tpu.memory_space<vmem>>) attributes {dimension_semantics = [#tpu.dimension_semantics<parallel>], iteration_bounds = array<i64: 2>, scalar_prefetch = 0 : i64, scratch_operands = 0 : i64, tpu.core_type = #tpu.core_type<tc>, window_params = [{transform_indices = @transform_0, window_bounds = array<i64: 16, 128>}, {pipeline_mode = #tpu.pipeline_mode<synchronous>, transform_indices = @transform_1, window_bounds = array<i64: 128, 128>}, {pipeline_mode = #tpu.pipeline_mode<synchronous>, transform_indices = @transform_2, window_bounds = array<i64: 1, 128>}, {pipeline_mode = #tpu.pipeline_mode<synchronous>, transform_indices = @transform_3, window_bounds = array<i64: 128, 64>}, {pipeline_mode = #tpu.pipeline_mode<synchronous>, transform_indices = @transform_4, window_bounds = array<i64: 1, 64>}, {pipeline_mode = #tpu.pipeline_mode<synchronous>, transform_indices = @transform_5, window_bounds = array<i64: 64, 64>}, {pipeline_mode = #tpu.pipeline_mode<synchronous>, transform_indices = @transform_6, window_bounds = array<i64: 1, 64>}, {transform_indices = @transform_7, window_bounds = array<i64: 16, 64>}]} {
    %c0 = arith.constant 0 : index
    %c0_0 = arith.constant 0 : index
    %0 = vector.load %arg1[%c0, %c0_0] : memref<16x128xf32, #tpu.memory_space<vmem>>, vector<16x128xf32>
    %1 = arith.truncf %0 : vector<16x128xf32> to vector<16x128xbf16>
    %c0_1 = arith.constant 0 : index
    %c0_2 = arith.constant 0 : index
    %2 = vector.load %arg2[%c0_1, %c0_2] : memref<128x128xbf16, #tpu.memory_space<vmem>>, vector<128x128xbf16>
    %cst = arith.constant dense<0.000000e+00> : vector<16x128xf32>
    %3 = tpu.matmul %1, %2, %cst {dimension_numbers = #tpu.dot_dimension_numbers<[1], [0], [0], [1], [0, 0, 1, 1], [], []>} : vector<16x128xbf16>, vector<128x128xbf16>, vector<16x128xf32> -> vector<16x128xf32>
    %c0_3 = arith.constant 0 : index
    %c0_4 = arith.constant 0 : index
    %4 = vector.load %arg3[%c0_3, %c0_4] : memref<1x128xf32, #tpu.memory_space<vmem>>, vector<1x128xf32>
    %5 = vector.broadcast %4 : vector<1x128xf32> to vector<16x128xf32>
    %6 = arith.addf %3, %5 : vector<16x128xf32>
    %cst_5 = arith.constant 0.000000e+00 : f32
    %7 = vector.broadcast %cst_5 : f32 to vector<16x128xf32>
    %8 = arith.maximumf %6, %7 : vector<16x128xf32>
    %9 = arith.truncf %8 : vector<16x128xf32> to vector<16x128xbf16>
    %c0_6 = arith.constant 0 : index
    %c0_7 = arith.constant 0 : index
    %10 = vector.load %arg4[%c0_6, %c0_7] : memref<128x64xbf16, #tpu.memory_space<vmem>>, vector<128x64xbf16>
    %cst_8 = arith.constant dense<0.000000e+00> : vector<16x64xf32>
    %11 = tpu.matmul %9, %10, %cst_8 {dimension_numbers = #tpu.dot_dimension_numbers<[1], [0], [0], [1], [0, 0, 1, 1], [], []>} : vector<16x128xbf16>, vector<128x64xbf16>, vector<16x64xf32> -> vector<16x64xf32>
    %c0_9 = arith.constant 0 : index
    %c0_10 = arith.constant 0 : index
    %12 = vector.load %arg5[%c0_9, %c0_10] : memref<1x64xf32, #tpu.memory_space<vmem>>, vector<1x64xf32>
    %13 = vector.broadcast %12 : vector<1x64xf32> to vector<16x64xf32>
    %14 = arith.addf %11, %13 : vector<16x64xf32>
    %cst_11 = arith.constant 0.000000e+00 : f32
    %15 = vector.broadcast %cst_11 : f32 to vector<16x64xf32>
    %16 = arith.maximumf %14, %15 : vector<16x64xf32>
    %17 = arith.truncf %16 : vector<16x64xf32> to vector<16x64xbf16>
    %c0_12 = arith.constant 0 : index
    %c0_13 = arith.constant 0 : index
    %18 = vector.load %arg6[%c0_12, %c0_13] : memref<64x64xbf16, #tpu.memory_space<vmem>>, vector<64x64xbf16>
    %cst_14 = arith.constant dense<0.000000e+00> : vector<16x64xf32>
    %19 = tpu.matmul %17, %18, %cst_14 {dimension_numbers = #tpu.dot_dimension_numbers<[1], [0], [0], [1], [0, 0, 1, 1], [], []>} : vector<16x64xbf16>, vector<64x64xbf16>, vector<16x64xf32> -> vector<16x64xf32>
    %c0_15 = arith.constant 0 : index
    %c0_16 = arith.constant 0 : index
    %20 = vector.load %arg7[%c0_15, %c0_16] : memref<1x64xf32, #tpu.memory_space<vmem>>, vector<1x64xf32>
    %21 = vector.broadcast %20 : vector<1x64xf32> to vector<16x64xf32>
    %22 = arith.addf %19, %21 : vector<16x64xf32>
    %23 = arith.mulf %22, %22 : vector<16x64xf32>
    %cst_17 = arith.constant dense<0.000000e+00> : vector<16xf32>
    %24 = vector.multi_reduction <add>, %23, %cst_17 [1] : vector<16x64xf32> to vector<16xf32>
    %25 = vector.shape_cast %24 : vector<16xf32> to vector<16x1xf32>
    %cst_18 = arith.constant 1.000000e-24 : f32
    %26 = vector.broadcast %cst_18 : f32 to vector<16x1xf32>
    %27 = arith.maximumf %25, %26 : vector<16x1xf32>
    %28 = math.rsqrt %27 : vector<16x1xf32>
    %29 = vector.broadcast %28 : vector<16x1xf32> to vector<16x64xf32>
    %30 = arith.mulf %22, %29 : vector<16x64xf32>
    %c0_19 = arith.constant 0 : index
    %c0_20 = arith.constant 0 : index
    %31 = vector.load %arg8[%c0_19, %c0_20] : memref<16x64xf32, #tpu.memory_space<vmem>>, vector<16x64xf32>
    tpu.vector_store %arg8[%c0_19, %c0_20], %30 {strides = array<i32>} : memref<16x64xf32, #tpu.memory_space<vmem>>, vector<16x64xf32>,
    return
  }
  func.func @transform_0(%arg0: i32) -> (i32, i32) {
    %c0_i32 = arith.constant 0 : i32
    %c0_i32_0 = arith.constant 0 : i32
    return %arg0, %c0_i32 : i32, i32
  }
  func.func @transform_1(%arg0: i32) -> (i32, i32) {
    %c0_i32 = arith.constant 0 : i32
    %c0_i32_0 = arith.constant 0 : i32
    %c0_i32_1 = arith.constant 0 : i32
    return %c0_i32, %c0_i32_0 : i32, i32
  }
  func.func @transform_2(%arg0: i32) -> (i32, i32) {
    %c0_i32 = arith.constant 0 : i32
    %c0_i32_0 = arith.constant 0 : i32
    %c0_i32_1 = arith.constant 0 : i32
    return %c0_i32, %c0_i32_0 : i32, i32
  }
  func.func @transform_3(%arg0: i32) -> (i32, i32) {
    %c0_i32 = arith.constant 0 : i32
    %c0_i32_0 = arith.constant 0 : i32
    %c0_i32_1 = arith.constant 0 : i32
    return %c0_i32, %c0_i32_0 : i32, i32
  }
  func.func @transform_4(%arg0: i32) -> (i32, i32) {
    %c0_i32 = arith.constant 0 : i32
    %c0_i32_0 = arith.constant 0 : i32
    %c0_i32_1 = arith.constant 0 : i32
    return %c0_i32, %c0_i32_0 : i32, i32
  }
  func.func @transform_5(%arg0: i32) -> (i32, i32) {
    %c0_i32 = arith.constant 0 : i32
    %c0_i32_0 = arith.constant 0 : i32
    %c0_i32_1 = arith.constant 0 : i32
    return %c0_i32, %c0_i32_0 : i32, i32
  }
  func.func @transform_6(%arg0: i32) -> (i32, i32) {
    %c0_i32 = arith.constant 0 : i32
    %c0_i32_0 = arith.constant 0 : i32
    %c0_i32_1 = arith.constant 0 : i32
    return %c0_i32, %c0_i32_0 : i32, i32
  }
  func.func @transform_7(%arg0: i32) -> (i32, i32) {
    %c0_i32 = arith.constant 0 : i32
    %c0_i32_0 = arith.constant 0 : i32
    return %arg0, %c0_i32 : i32, i32
  }
}

</mosaic_0001>

<bundles_post_ra>
// kernel: tpu_custom_call.1
= control target key start
LH: loop header
LB: loop body
LE: loop exit
PB: predicated region body
PF: predicated region fallthrough
CT: control target
= control target key end

     0   :  { %12 = vsyncpa [#allocation3], 0  ;;  %s1258_s0 = inlined_call_operand.vmem [shape: f32[32,128], index: 0, kind: input, shape index: {}]   ;;  %s1259_s1 = inlined_call_operand.vmem [shape: bf16[128,128], index: 1, kind: input, shape index: {}]   ;;  %s1260_s2 = inlined_call_operand.vmem [shape: f32[1,128], index: 2, kind: input, shape index: {}]   ;;  %s1261_s3 = inlined_call_operand.vmem [shape: bf16[128,64], index: 3, kind: input, shape index: {}]   ;;  %s1262_s4 = inlined_call_operand.vmem [shape: f32[1,64], index: 4, kind: input, shape index: {}]   ;;  %s1263_s5 = inlined_call_operand.hbm [shape: bf16[64,64], index: 5, kind: input, shape index: {}]   ;;  %s1264_s6 = inlined_call_operand.vmem [shape: f32[1,64], index: 6, kind: input, shape index: {}]   ;;  %s1265_s7 = inlined_call_operand.hbm [shape: f32[32,64], index: 7, kind: output, shape index: {}]  }
   0x1   :  { %13 = vsyncpa [#allocation4], 0 }
   0x2   :  { %15 = vsyncpa [#allocation4 + $0x1], 0  ;;  %s1051_s24 = smov 0   ;;  %s1053_s25 = smov 0  }
   0x3   :  { %s1055_s26 = smov 0   ;;  %s1057_s27 = smov 0  }
   0x4 LB: > { %s1072_s28 = sadd.s32 4294967295, %s1001_s27   ;;  %s717_s29 = sadd.s32 4294967294, %s1001_s27   ;;  %s1001_s27 = sphi %s1057_s27, %s1273_s27   ;;  %s997_s26 = sphi %s1055_s26, %s1272_s26   ;;  %s993_s25 = sphi %s1053_s25, %s1271_s25   ;;  %s989_s24 = sphi %s1051_s24, %s1270_s24  }
   0x5   : > { %s1076_s30 = sadd.s32 1, %s1001_s27   ;;  %s180_s8 = sadd.s32 1, %s997_s26 }
   0x6   : > { %s177_s9 = ssub.s32 %s1001_s27, %s1076_s30  ;;  %p190_p0 = scmp.ne.s32.totalorder %s997_s26, %s993_s25 }
   0x7   : > { %p178_p1 = scmp.eq.s32.totalorder %s177_s9, 0  ;;  %p191_p2 = scmp.eq.s32.totalorder %s1072_s28, 1 }
   0x8   : > { %p196_p3 = scmp.ne.s32.totalorder %s993_s25, %s989_s24  ;;  %p197_p4 = scmp.eq.s32.totalorder %s717_s29, 1 }
   0x9   : > { %s1087_s10 = scalar_select %p178_p1, %s997_s26, %s180_s8  }
   0xa   : > { %p1089_p5 = por %p191_p2, %p190_p0  ;;  %p1093_p6 = por %p197_p4, %p196_p3 }
   0xb   : > { %p718_p7 = scmp.ge.s32.totalorder %s1001_s27, 1  ;;  %p204_p8 = scmp.lt.s32.totalorder %s1001_s27, 3 }
   0xc   : > { %s1267_s12 = scalar_select %p1093_p6, 1, 0 }
   0xd   : > { %p845_p9 = scmp.eq.s32.totalorder %s1072_s28, 0  ;;  %p1100_p10 = pnand %p718_p7, %p204_p8 }
   0xe   : > { %s1003_s14 = smov [#allocation2]  }
   0xf   : > { %s228_s15 = sshll.u32 %s1003_s14, 4  ;;  %p837_p11 = pneg %p1100_p10  ;;  %s229_s15 = int_to_ptr.vmem [resolvable:$true] %s228_s15 }
  0x10   : > { %s922_s16 = scalar_lea.vmem %s229_s15, 512  ;;  %p930_p3 = scmp.lt.s32.totalorder %s229_s15, %s229_s15 }
  0x11   : > { %p838_p12 = pnand %p845_p9, %p837_p11  ;;  %p923_p0 = scmp.ne.s32.totalorder %s229_s15, %s922_s16 }
  0x12   : > { %p931_p4 = scmp.lt.s32.totalorder %s922_s16, %s922_s16 }
  0x13   : > { %p913_p13 = pneg %p838_p12 }
  0x14   : > { %p932_p6 = por %p931_p4, %p930_p3 }
  0x15   : > { %p925_p1 = pnand %p923_p0, %p913_p13 }
  0x17   : > { %p926_p2 = pneg %p925_p1 }
  0x19   : > { %p933_p7 = pnand %p932_p6, %p926_p2 }
  0x1b   : > { %936 = shalt.err (!%p933_p7)
}
  0x1c   : > { %s1004_s17 = smov 64   ;;  %s1005_s18 = smov 4  }
  0x1d   : > { %840 = dma.hbm_to_vmem [thread:$0]  (!%p838_p12), %s1263_s5, 512, %s229_s15, [#allocation3], %s1004_s17, %s1004_s17, %s1005_s18  }
  0x1e   : > { %256 = sbr.rel (%p1100_p10) target bundleno = 848 (0x350), region = 48 }
  0x23   : > { %980 = dma.done.wait (%p845_p9), [#allocation3], 512  }
  0x24   : > { %982 = vsyncadd (%p845_p9), [#allocation3], 4294966784  ;;  %v1006_v0 = vmov 0.0   ;;  %vm1007_vm0 = vmmov 0   ;;  %v887_v1 = vld [vmem:[%s1259_s1 + $0x38] sm:$0xff]   ;;  %v888_v2 = vld [vmem:[%s1259_s1 + $0x30] sm:$0xff]  }
  0x25   : > { %779 = vmatprep.subr.bf16.mxu0 %v1006_v0  ;;  %795 = vmatprep.mubr.msk.bf16.mxu0 %vm1007_vm0, %v1006_v0  ;;  %v889_v3 = vld [vmem:[%s1259_s1 + $0x28] sm:$0xff]   ;;  %s724_s13 = sshll.u32 %s1072_s28, 1  ;;  %v895_v4 = vld [vmem:[%s1261_s3 + $0x38] sm:$0xff]   ;;  %v890_v5 = vld [vmem:[%s1259_s1 + $0x20] sm:$0xff]   ;;  %vm568_vm1 = vcmask 523264   ;;  %s755_s29 = sshll.u32 %s1072_s28, 8 }
  0x26   : > { %799 = vmatprep.subr.bf16.mxu1 %v1006_v0  ;;  %815 = vmatprep.mubr.msk.bf16.mxu1 %vm1007_vm0, %v1006_v0  ;;  %p289_p6 = scmp.lt.s32.totalorder %s724_s13, 3  ;;  %v896_v6 = vld [vmem:[%s1261_s3 + $0x30] sm:$0xff]   ;;  %v891_v7 = vld [vmem:[%s1259_s1 + $0x18] sm:$0xff]   ;;  %v897_v8 = vld [vmem:[%s1261_s3 + $0x28] sm:$0xff]   ;;  %s1213_s16 = scalar_lea.hbm %s1265_s7, %s755_s29 }
  0x27   : > { %780 = vmatpush3.bf16.msra.mxu0 %v887_v1  ;;  %800 = vmatpush3.bf16.msra.mxu1 %v895_v4  ;;  %v892_v9 = vld [vmem:[%s1259_s1 + $0x10] sm:$0xff]   ;;  %v898_v10 = vld [vmem:[%s1261_s3 + $0x20] sm:$0xff]   ;;  %v893_v11 = vld [vmem:[%s1259_s1 + $0x8] sm:$0xff]   ;;  %s1008_s18 = smov [#allocation5]  }
  0x28   : > { %781 = vmatprep.subr.bf16.mxu0 %v1006_v0  ;;  %801 = vmatprep.subr.bf16.mxu1 %v1006_v0  ;;  %s1275_s13 = smov (!%p289_p6, %s724_s13), 3  ;;  %v899_v12 = vld [vmem:[%s1261_s3 + $0x18] sm:$0xff]   ;;  %v894_v13 = vld [vmem:[%s1259_s1] sm:$0xff]   ;;  %v900_v17 = vld [vmem:[%s1261_s3 + $0x10] sm:$0xff]   ;;  %s941_s19 = sshll.u32 %s1008_s18, 4  ;;  %s942_s19 = int_to_ptr.vmem [resolvable:$false] %s941_s19 }
  0x29   : > { %s725_s15 = sshll.u32 %s1275_s13, 3  ;;  %v901_v18 = vld [vmem:[%s1261_s3 + $0x8] sm:$0xff]   ;;  %v902_v19 = vld [vmem:[%s1261_s3] sm:$0xff]   ;;  %v903_v20 = vld [vmem:[#allocation2 + $0x18] sm:$0xff]   ;;  %s285_s13 = sand.u32 1, %s993_s25  }
  0x2a   : > { %s292_s20 = scalar_lea.vmem %s1258_s0, %s725_s15  ;;  %v726_v21 = vld [vmem:[%s1260_s2] ss:$0 sm:$0xff]  ;;  %v904_v31 = vld [vmem:[#allocation2 + $0x10] sm:$0xff]   ;;  %v905_v32 = vld [vmem:[#allocation2 + $0x8] sm:$0xff]   ;;  %s723_s23 = sshll.u32 %s285_s13, 4 }
  0x2b   : > { %782 = vmatpush3.bf16.msra.mxu0 %v888_v2  ;;  %802 = vmatpush3.bf16.msra.mxu1 %v896_v6  ;;  %v296_v14 = vld [vmem:[%s292_s20] sm:$0xff]  ;;  %v297_v15 = vld [vmem:[%s292_s20 + $0x8] sm:$0xff]  ;;  %s287_s8 = scalar_lea.vmem [#allocation5], %s723_s23  ;;  %s1218_s17 = scalar_lea.sflag [#allocation4], %s285_s13 }
  0x2c   : > { %783 = vmatprep.subr.bf16.mxu0 %v1006_v0  ;;  %803 = vmatprep.subr.bf16.mxu1 %v1006_v0  ;;  %v298_v16 = vpack.c.bf16 %v297_v15, %v296_v14  ;;  %v906_v33 = vld [vmem:[#allocation2] sm:$0xff]   ;;  %s643_s9 = sshll.u32 %s287_s8, 4  ;;  %s943_s20 = scalar_lea.vmem %s942_s19, 512  ;;  %s1215_s9 = int_to_ptr.vmem [resolvable:$true] %s643_s9 }
  0x2d   : > { %v735_v34 = vld [vmem:[%s1262_s4] ss:$0 sm:$0xff]  ;;  %s937_s28 = scalar_lea.vmem %s1215_s9, 256  ;;  %p944_p11 = scmp.lt.s32.totalorder %s1215_s9, %s942_s19 }
  0x2e   : > { %v744_v44 = vld [vmem:[%s1264_s6] ss:$0 sm:$0xff]  ;;  %p938_p8 = scmp.ne.s32.totalorder %s1215_s9, %s937_s28  ;;  %p945_p12 = scmp.lt.s32.totalorder %s943_s20, %s937_s28 }
  0x2f   : > { %784 = vmatpush3.bf16.msra.mxu0 %v889_v3  ;;  %804 = vmatpush3.bf16.msra.mxu1 %v897_v8 }
  0x30   : > { %785 = vmatprep.subr.bf16.mxu0 %v1006_v0  ;;  %805 = vmatprep.subr.bf16.mxu1 %v1006_v0  ;;  %p939_p9 = pnand %p938_p8, %p1089_p5  ;;  %p946_p13 = por %p945_p12, %p944_p11 }
  0x32   : > { %p940_p10 = pneg %p939_p9 }
  0x33   : > { %786 = vmatpush3.bf16.msra.mxu0 %v890_v5  ;;  %806 = vmatpush3.bf16.msra.mxu1 %v898_v10 }
  0x34   : > { %787 = vmatprep.subr.bf16.mxu0 %v1006_v0  ;;  %807 = vmatprep.subr.bf16.mxu1 %v1006_v0  ;;  %p947_p0 = pnand %p946_p13, %p940_p10 }
  0x37   : > { %788 = vmatpush3.bf16.msra.mxu0 %v891_v7  ;;  %808 = vmatpush3.bf16.msra.mxu1 %v899_v12 }
  0x38   : > { %789 = vmatprep.subr.bf16.mxu0 %v1006_v0  ;;  %809 = vmatprep.subr.bf16.mxu1 %v1006_v0 }
  0x3b   : > { %790 = vmatpush3.bf16.msra.mxu0 %v892_v9  ;;  %810 = vmatpush3.bf16.msra.mxu1 %v900_v17 }
  0x3c   : > { %791 = vmatprep.subr.bf16.mxu0 %v1006_v0  ;;  %811 = vmatprep.subr.bf16.mxu1 %v1006_v0 }
  0x3f   : > { %792 = vmatpush3.bf16.msra.mxu0 %v893_v11  ;;  %812 = vmatpush3.bf16.msra.mxu1 %v901_v18 }
  0x40   : > { %793 = vmatprep.subr.bf16.mxu0 %v1006_v0  ;;  %813 = vmatprep.subr.bf16.mxu1 %v1006_v0 }
  0x43   : > { %794 = vmatpush3.bf16.msra.mxu0 %v894_v13  ;;  %814 = vmatpush3.bf16.msra.mxu1 %v902_v19 }
  0x44   : > { %819 = vmatprep.subr.bf16.mxu0 %v1006_v0 }
  0x46   : > { %796 = vmatmul.mubr.bf16.vlgmr.msra.gmra.mxu0 %v298_v16 }
  0x47   : > { %827 = vmatprep.mubr.msk.bf16.mxu0 %vm1007_vm0, %v1006_v0  ;;  %820 = vmatpush3.bf16.msra.mxu0 %v903_v20 }
  0x48   : > { %821 = vmatprep.subr.bf16.mxu0 %v1006_v0 }
  0x4b   : > { %822 = vmatpush3.bf16.msra.mxu0 %v904_v31 }
  0x4c   : > { %823 = vmatprep.subr.bf16.mxu0 %v1006_v0 }
  0x4f   : > { %824 = vmatpush3.bf16.msra.mxu0 %v905_v32 }
  0x50   : > { %825 = vmatprep.subr.bf16.mxu0 %v1006_v0 }
  0x53   : > { %826 = vmatpush3.bf16.msra.mxu0 %v906_v33 }
 0x106   : > { %v404_v22 = vpop.f32.mrf.mxu0 }
 0x107   : > { %v405_v24 = vadd.f32 %v726_v21, %v404_v22 }
 0x108   : > { %v797_v23 = vpop.f32.mrf.mxu0 }
 0x109   : > { %v411_v28 = vmax.f32 %v405_v24, 0.0 }
 0x10a   : > { %v407_v25 = vpop.f32.mrf.mxu0 }
 0x10b   : > { %v408_v26 = vadd.f32 %v726_v21, %v407_v25 }
 0x10c   : > { %v798_v27 = vpop.f32.mrf.mxu0 }
 0x10d   : > { %v412_v29 = vmax.f32 %v408_v26, 0.0 }
 0x10f   : > { %v413_v30 = vpack.c.bf16 %v412_v29, %v411_v28 }
 0x111   : > { %816 = vmatmul.mubr.bf16.vlgmr.msra.gmra.mxu1 %v413_v30 }
 0x1d1   : > { %v519_v35 = vpop.f32.mrf.mxu1 }
 0x1d2   : > { %v520_v37 = vadd.f32 %v735_v34, %v519_v35 }
 0x1d3   : > { %v817_v36 = vpop.f32.mrf.mxu1 }
 0x1d4   : > { %v526_v41 = vmax.f32 %v520_v37, 0.0 }
 0x1d5   : > { %v522_v38 = vpop.f32.mrf.mxu1 }
 0x1d6   : > { %v523_v39 = vadd.f32 %v735_v34, %v522_v38 }
 0x1d7   : > { %v818_v40 = vpop.f32.mrf.mxu1 }
 0x1d8   : > { %v527_v42 = vmax.f32 %v523_v39, 0.0 }
 0x1da   : > { %v528_v43 = vpack.c.bf16 %v527_v42, %v526_v41 }
 0x1dc   : > { %828 = vmatmul.mubr.msk.bf16.vlgmr.msra.gmra.mxu0 %vm568_vm1, %v528_v43 }
 0x29c   : > { %v606_v45 = vpop.f32.mrf.mxu0 }
 0x29d   : > { %v607_v46 = vadd.f32 %v744_v44, %v606_v45 }
 0x29e   : > { %v829_v47 = vpop.f32.mrf.mxu0 }
 0x29f   : > { %v613_v48 = vmul.f32 %v607_v46, %v607_v46 }
 0x2a0   : > { %v609_v49 = vpop.f32.mrf.mxu0 }
 0x2a1   : > { %v610_v50 = vadd.f32 %v744_v44, %v609_v49  ;;  %v615_v51 = vsel %vm568_vm1, %v613_v48, 0.0 }
 0x2a2   : > { %616 = vadd.xlane.f32.xlu0 %v615_v51  ;;  %v830_v52 = vpop.f32.mrf.mxu0 }
 0x2a3   : > { %v614_v53 = vmul.f32 %v610_v50, %v610_v50 }
 0x2a5   : > { %v618_v54 = vsel %vm568_vm1, %v614_v53, 0.0 }
 0x2a6   : > { %619 = vadd.xlane.f32.xlu0 %v618_v54 }
 0x32b   : > { %v617_v55 = vpop.xlane.xlu0 %616 }
 0x32c   : > { %v621_v56 = vmax.f32 %v617_v55, 1e-24 }
 0x32e   : > { %907 = vrsqrt.f32 %v621_v56 }
 0x32f   : > { %v620_v57 = vpop.xlane.xlu0 %619 }
 0x330   : > { %v622_v58 = vmax.f32 %v620_v57, 1e-24 }
 0x332   : > { %909 = vrsqrt.f32 %v622_v58 }
 0x33b   : > { %v908_v59 = vpop.eup %907 }
 0x33c   : > { %v625_v60 = vmul.f32 %v908_v59, %v607_v46 }
 0x33e   : > { %627 = vst.msk [vmem:[%s287_s8] sm:$0xff] %vm568_vm1, %v625_v60 }
 0x33f   : > { %v910_v61 = vpop.eup %909 }
 0x340   : > { %v626_v62 = vmul.f32 %v910_v61, %v610_v50 }
 0x342   : > { %628 = vst.msk [vmem:[%s287_s8 + $0x8] sm:$0xff] %vm568_vm1, %v626_v62 }
 0x343   : > { %950 = shalt.err (!%p947_p0)
}
 0x344   : > { %s951_s21 = scalar_lea.hbm %s1213_s16, 256  ;;  %s955_s23 = scalar_lea.hbm %s1265_s7, 512 }
 0x345   : > { %p952_p1 = scmp.ne.s32.totalorder %s1213_s16, %s951_s21  ;;  %p956_p4 = scmp.lt.s32.totalorder %s1213_s16, %s1265_s7 }
 0x346   : > { %p957_p7 = scmp.lt.s32.totalorder %s955_s23, %s951_s21 }
 0x347   : > { %p953_p2 = pnand %p952_p1, %p1089_p5 }
 0x348   : > { %p958_p6 = por %p957_p7, %p956_p4 }
 0x349   : > { %p954_p3 = pneg %p953_p2 }
 0x34b   : > { %p959_p8 = pnand %p958_p6, %p954_p3 }
 0x34d   : > { %962 = shalt.err (!%p959_p8)
}
 0x34e   : > { %s1009_s14 = smov 128   ;;  %s1010_s15 = smov 8  }
 0x34f   : > { %835 = dma.vmem_to_hbm [thread:$0]  (%p1089_p5), %s1215_s9, 256, %s1213_s16, %s1218_s17, %s1009_s14, %s1009_s14, %s1010_s15  }
 0x350 PF: > { %p847_p9 = scmp.ge.s32.totalorder %s1001_s27, 2  ;;  %s658_s28 = sand.u32 1, %s989_s24  }
 0x351   : > { %p1269_p10 = scmp.ne.s32.totalorder %s1267_s12, 0  ;;  %s659_s18 = scalar_lea.sflag [#allocation4], %s658_s28 }
 0x353   : > { %p842_p11 = pnand %p847_p9, %p1269_p10 }
 0x355   : > { %p843_p12 = pneg %p842_p11 }
 0x357   : > { %984 = dma.done.wait (%p843_p12), %s659_s18, 256  }
 0x358   : > { %986 = vsyncadd (%p843_p12), %s659_s18, 4294967040  ;;  %p18_p13 = scmp.ge.s32.totalorder %s1076_s30, 4   ;;  %s1270_s24 = smov %s993_s25 }
 0x359   : > { %s1271_s25 = smov %s997_s26  ;;  %s1272_s26 = smov %s1087_s10 }
 0x35a   : > { %s1273_s27 = smov %s1076_s30  ;;  %20 = sbr.rel (!%p18_p13) target bundleno = 4 (0x4), region = 88 }
 0x35f   :  { %664 = vsyncpa [#allocation3], 1 }
 0x360   :  { %666 = vsyncpa [#allocation3 + $0x1], 1 }
 0x361   :  { %667 = vsyncpa [#allocation4], 1 }
 0x362   :  { %669 = vsyncpa [#allocation4 + $0x1], 1 }

</bundles_post_ra>
